<compile_context>
chip_gen: v7x
topology: tpu7x:2x2x1
jax: 0.10.0
libtpu: 0.0.40
codegen_flags: <defaults>
</compile_context>

<pallas_src>
from functools import partial

import numpy as np
import jax
import jax.numpy as jnp
from jax.experimental import pallas as pl
from jax.experimental.pallas import tpu as pltpu


# ----------------------------------------------------------------------------
# Pallas kernel: fused 3-layer MLP on one batch tile
#   h1 = tanh(x @ W1 + b1)
#   h2 = tanh(h1 @ W2 + b2)
#   mu = 2.5 * sigmoid(h2 @ W3 + b3)
# ----------------------------------------------------------------------------
def mlp_gaussian_kernel(x_ref, w1_ref, b1_ref, w2_ref, b2_ref, w3_ref, b3_ref,
                        o_ref):
    x = x_ref[...]                                            # (TB, S)

    h1 = jnp.dot(x, w1_ref[...], preferred_element_type=jnp.float32)
    h1 = jnp.tanh(h1 + b1_ref[...])                           # (TB, F1p)

    h2 = jnp.dot(h1, w2_ref[...], preferred_element_type=jnp.float32)
    h2 = jnp.tanh(h2 + b2_ref[...])                           # (TB, F2p)

    z = jnp.dot(h2, w3_ref[...], preferred_element_type=jnp.float32)
    z = z + b3_ref[...]                                       # (TB, A)

    # 2.5 * sigmoid(z); EUP handles exp, the divide fuses the 2.5 scale.
    o_ref[...] = (2.5 / (1.0 + jnp.exp(-z))).astype(o_ref.dtype)


def _round_up(x, m):
    return (x + m - 1) // m * m


@partial(jax.jit, static_argnames=("block_b",))
def mlp_gaussian_forward(state, w1, b1, w2, b2, w3, b3, *, block_b=1024):
    """Fused MLP_Gaussian forward. Handles arbitrary batch via a 1-D grid.

    Weights are (in, out); biases are (out,) or (1, out)."""
    B, S = state.shape
    F1 = w1.shape[1]
    F2 = w2.shape[1]
    A = w3.shape[1]

    # Lane-pad hidden feature dims to multiples of 128 (zero padding ->
    # identical math, clean full-tile MXU ops).  Output dim is NOT padded:
    # the out block's last dim equals the full array dim (legal BlockSpec),
    # keeping HBM writeback minimal and contiguous.
    F1p = _round_up(F1, 128)
    F2p = _round_up(F2, 128)

    # Batch tile: multiple of 8 sublanes; small batches use a single block.
    tb = min(block_b, _round_up(B, 8))
    tb = _round_up(tb, 8)
    Bp = _round_up(B, tb)

    f32 = jnp.float32
    xp = jnp.pad(state.astype(f32), ((0, Bp - B), (0, 0)))
    w1p = jnp.pad(w1.astype(f32), ((0, 0), (0, F1p - F1)))
    b1p = jnp.pad(b1.reshape(1, -1).astype(f32), ((0, 0), (0, F1p - F1)))
    w2p = jnp.pad(w2.astype(f32), ((0, F1p - F1), (0, F2p - F2)))
    b2p = jnp.pad(b2.reshape(1, -1).astype(f32), ((0, 0), (0, F2p - F2)))
    w3p = jnp.pad(w3.astype(f32), ((0, F2p - F2), (0, 0)))
    b3p = b3.reshape(1, -1).astype(f32)

    # Weights/biases: same block every step -> resident in VMEM, DMA'd once.
    resident = lambda shp: pl.BlockSpec(shp, lambda i: (0, 0))

    out = pl.pallas_call(
        mlp_gaussian_kernel,
        out_shape=jax.ShapeDtypeStruct((Bp, A), jnp.float32),
        grid=(Bp // tb,),
        in_specs=[
            pl.BlockSpec((tb, S), lambda i: (i, 0)),   # state: tiled over batch
            resident((S, F1p)), resident((1, F1p)),
            resident((F1p, F2p)), resident((1, F2p)),
            resident((F2p, A)), resident((1, A)),
        ],
        out_specs=pl.BlockSpec((tb, A), lambda i: (i, 0)),
        compiler_params=pltpu.CompilerParams(
            # Split batch tiles across the two TensorCores on v7x; harmless
            # on single-TC v5e/v6e.
            dimension_semantics=("parallel",),
            # Explicit scoped-VMEM budget: ~2.5 MiB actually used at TB=1024,
            # safe on v5e/v6e (128 MiB phys) and v7x (64 MiB phys).
            vmem_limit_bytes=32 * 1024 * 1024,
        ),
    )(xp, w1p, b1p, w2p, b2p, w3p, b3p)

    return out[:B]


# ----------------------------------------------------------------------------
# Deterministic parameter init (mirrors nn.init.orthogonal_(gain=sqrt(2)) and
# zero bias, but with our own fixed seed — synthetic weights, not a checkpoint)
# ----------------------------------------------------------------------------
def orthogonal_init(rng, out_dim, in_dim, gain):
    # PyTorch semantics: orthogonal_ on a (out_dim, in_dim) weight matrix.
    a = rng.standard_normal((out_dim, in_dim)).astype(np.float64)
    flat = a.reshape(out_dim, -1)
    q, r = np.linalg.qr(flat.T if out_dim < in_dim else flat)
    q *= np.sign(np.diag(r))  # make decomposition unique
    if out_dim < in_dim:
        q = q.T
    w = gain * q[:out_dim, :in_dim]
    return w.astype(np.float32)


def make_params(state_dim, fc1_dim, fc2_dim, action_dim, seed=0):
    rng = np.random.default_rng(seed)
    gain = np.sqrt(2.0)
    # Torch Linear weights are (out, in); we store transposed (in, out).
    w1 = orthogonal_init(rng, fc1_dim, state_dim, gain).T
    w2 = orthogonal_init(rng, fc2_dim, fc1_dim, gain).T
    w3 = orthogonal_init(rng, action_dim, fc2_dim, gain).T
    b1 = np.zeros((1, fc1_dim), np.float32)
    b2 = np.zeros((1, fc2_dim), np.float32)
    b3 = np.zeros((1, action_dim), np.float32)
    return tuple(jnp.asarray(p) for p in (w1, b1, w2, b2, w3, b3))


def reference_forward(state, w1, b1, w2, b2, w3, b3):
    h1 = jnp.tanh(state @ w1 + b1)
    h2 = jnp.tanh(h1 @ w2 + b2)
    return 2.5 * jax.nn.sigmoid(h2 @ w3 + b3)


if __name__ == "__main__":
    # Shapes consistent with the module: state_dim=8, fc1=32, fc2=32, action=4.
    state_dim, fc1_dim, fc2_dim, action_dim = 8, 32, 32, 4
    params = make_params(state_dim, fc1_dim, fc2_dim, action_dim, seed=0)

    key = jax.random.PRNGKey(0)
    k_small, k_big = jax.random.split(key)

    ok = True

    # 1) Small batch (B=2): single grid step, exercises batch padding.
    state2 = jax.random.normal(k_small, (2, state_dim), dtype=jnp.float32)
    mu2 = jax.block_until_ready(mlp_gaussian_forward(state2, *params))
    ref2 = np.asarray(reference_forward(state2, *params))
    mu2 = np.asarray(mu2)
    ok &= mu2.shape == (2, action_dim)
    ok &= np.allclose(mu2, ref2, rtol=1e-5, atol=1e-5)
    ok &= bool(np.all(mu2 >= 0.0) and np.all(mu2 <= 2.5))

    # 2) Larger batch (B=512): resident weights, lane-dense resident tiles.
    state512 = jax.random.normal(k_big, (512, state_dim), dtype=jnp.float32)
    mu512 = jax.block_until_ready(mlp_gaussian_forward(state512, *params))
    ref512 = np.asarray(reference_forward(state512, *params))
    mu512 = np.asarray(mu512)
    ok &= mu512.shape == (512, action_dim)
    ok &= np.allclose(mu512, ref512, rtol=1e-5, atol=1e-5)
    ok &= bool(np.all(mu512 >= 0.0) and np.all(mu512 <= 2.5))

    # 3) Multi-tile grid (B=2048 > default small-batch tile shrink path not hit,
    #    but > one 1024-row tile): exercises the batch-tiled grid + parallel axis.
    state2048 = jax.random.normal(k_big, (2048, state_dim), dtype=jnp.float32)
    mu2048 = jax.block_until_ready(mlp_gaussian_forward(state2048, *params))
    ref2048 = np.asarray(reference_forward(state2048, *params))
    ok &= np.asarray(mu2048).shape == (2048, action_dim)
    ok &= np.allclose(np.asarray(mu2048), ref2048, rtol=1e-5, atol=1e-5)

    assert ok, "Pallas MLP_Gaussian kernel mismatch vs reference"
    print("KERNEL_OK")
</pallas_src>

<mosaic_0001>
module attributes {stable_mosaic.version = 11 : i64} {
  func.func @mlp_gaussian_kernel(%arg0: i32, %arg1: memref<8x8xf32, #tpu.memory_space<vmem>>, %arg2: memref<8x128xf32, #tpu.memory_space<vmem>>, %arg3: memref<1x128xf32, #tpu.memory_space<vmem>>, %arg4: memref<128x128xf32, #tpu.memory_space<vmem>>, %arg5: memref<1x128xf32, #tpu.memory_space<vmem>>, %arg6: memref<128x4xf32, #tpu.memory_space<vmem>>, %arg7: memref<1x4xf32, #tpu.memory_space<vmem>>, %arg8: memref<8x4xf32, #tpu.memory_space<vmem>>) attributes {dimension_semantics = [#tpu.dimension_semantics<parallel>], iteration_bounds = array<i64: 1>, scalar_prefetch = 0 : i64, scratch_operands = 0 : i64, tpu.core_type = #tpu.core_type<tc>, window_params = [{transform_indices = @transform_0, window_bounds = array<i64: 8, 8>}, {pipeline_mode = #tpu.pipeline_mode<synchronous>, transform_indices = @transform_1, window_bounds = array<i64: 8, 128>}, {pipeline_mode = #tpu.pipeline_mode<synchronous>, transform_indices = @transform_2, window_bounds = array<i64: 1, 128>}, {pipeline_mode = #tpu.pipeline_mode<synchronous>, transform_indices = @transform_3, window_bounds = array<i64: 128, 128>}, {pipeline_mode = #tpu.pipeline_mode<synchronous>, transform_indices = @transform_4, window_bounds = array<i64: 1, 128>}, {pipeline_mode = #tpu.pipeline_mode<synchronous>, transform_indices = @transform_5, window_bounds = array<i64: 128, 4>}, {pipeline_mode = #tpu.pipeline_mode<synchronous>, transform_indices = @transform_6, window_bounds = array<i64: 1, 4>}, {transform_indices = @transform_7, window_bounds = array<i64: 8, 4>}]} {
    %c0 = arith.constant 0 : index
    %c0_0 = arith.constant 0 : index
    %0 = vector.load %arg1[%c0, %c0_0] : memref<8x8xf32, #tpu.memory_space<vmem>>, vector<8x8xf32>
    %c0_1 = arith.constant 0 : index
    %c0_2 = arith.constant 0 : index
    %1 = vector.load %arg2[%c0_1, %c0_2] : memref<8x128xf32, #tpu.memory_space<vmem>>, vector<8x128xf32>
    %cst = arith.constant dense<0.000000e+00> : vector<8x128xf32>
    %2 = tpu.matmul %0, %1, %cst {dimension_numbers = #tpu.dot_dimension_numbers<[1], [0], [0], [1], [0, 0, 1, 1], [], []>} : vector<8x8xf32>, vector<8x128xf32>, vector<8x128xf32> -> vector<8x128xf32>
    %c0_3 = arith.constant 0 : index
    %c0_4 = arith.constant 0 : index
    %3 = vector.load %arg3[%c0_3, %c0_4] : memref<1x128xf32, #tpu.memory_space<vmem>>, vector<1x128xf32>
    %4 = vector.broadcast %3 : vector<1x128xf32> to vector<8x128xf32>
    %5 = arith.addf %2, %4 : vector<8x128xf32>
    %6 = math.tanh %5 : vector<8x128xf32>
    %c0_5 = arith.constant 0 : index
    %c0_6 = arith.constant 0 : index
    %7 = vector.load %arg4[%c0_5, %c0_6] : memref<128x128xf32, #tpu.memory_space<vmem>>, vector<128x128xf32>
    %cst_7 = arith.constant dense<0.000000e+00> : vector<8x128xf32>
    %8 = tpu.matmul %6, %7, %cst_7 {dimension_numbers = #tpu.dot_dimension_numbers<[1], [0], [0], [1], [0, 0, 1, 1], [], []>} : vector<8x128xf32>, vector<128x128xf32>, vector<8x128xf32> -> vector<8x128xf32>
    %c0_8 = arith.constant 0 : index
    %c0_9 = arith.constant 0 : index
    %9 = vector.load %arg5[%c0_8, %c0_9] : memref<1x128xf32, #tpu.memory_space<vmem>>, vector<1x128xf32>
    %10 = vector.broadcast %9 : vector<1x128xf32> to vector<8x128xf32>
    %11 = arith.addf %8, %10 : vector<8x128xf32>
    %12 = math.tanh %11 : vector<8x128xf32>
    %c0_10 = arith.constant 0 : index
    %c0_11 = arith.constant 0 : index
    %13 = vector.load %arg6[%c0_10, %c0_11] : memref<128x4xf32, #tpu.memory_space<vmem>>, vector<128x4xf32>
    %cst_12 = arith.constant dense<0.000000e+00> : vector<8x4xf32>
    %14 = tpu.matmul %12, %13, %cst_12 {dimension_numbers = #tpu.dot_dimension_numbers<[1], [0], [0], [1], [0, 0, 1, 1], [], []>} : vector<8x128xf32>, vector<128x4xf32>, vector<8x4xf32> -> vector<8x4xf32>
    %c0_13 = arith.constant 0 : index
    %c0_14 = arith.constant 0 : index
    %15 = vector.load %arg7[%c0_13, %c0_14] : memref<1x4xf32, #tpu.memory_space<vmem>>, vector<1x4xf32>
    %16 = vector.broadcast %15 : vector<1x4xf32> to vector<8x4xf32>
    %17 = arith.addf %14, %16 : vector<8x4xf32>
    %cst_15 = arith.constant 0.000000e+00 : f32
    %18 = vector.broadcast %cst_15 : f32 to vector<8x4xf32>
    %19 = arith.subf %18, %17 : vector<8x4xf32>
    %20 = math.exp %19 : vector<8x4xf32>
    %cst_16 = arith.constant 1.000000e+00 : f32
    %21 = vector.broadcast %cst_16 : f32 to vector<8x4xf32>
    %22 = arith.addf %21, %20 : vector<8x4xf32>
    %cst_17 = arith.constant 2.500000e+00 : f32
    %23 = vector.broadcast %cst_17 : f32 to vector<8x4xf32>
    %24 = arith.divf %23, %22 : vector<8x4xf32>
    %c0_18 = arith.constant 0 : index
    %c0_19 = arith.constant 0 : index
    %25 = vector.load %arg8[%c0_18, %c0_19] : memref<8x4xf32, #tpu.memory_space<vmem>>, vector<8x4xf32>
    tpu.vector_store %arg8[%c0_18, %c0_19], %24 {strides = array<i32>} : memref<8x4xf32, #tpu.memory_space<vmem>>, vector<8x4xf32>,
    return
  }
  func.func @transform_0(%arg0: i32) -> (i32, i32) {
    %c0_i32 = arith.constant 0 : i32
    %c0_i32_0 = arith.constant 0 : i32
    return %arg0, %c0_i32 : i32, i32
  }
  func.func @transform_1(%arg0: i32) -> (i32, i32) {
    %c0_i32 = arith.constant 0 : i32
    %c0_i32_0 = arith.constant 0 : i32
    %c0_i32_1 = arith.constant 0 : i32
    return %c0_i32, %c0_i32_0 : i32, i32
  }
  func.func @transform_2(%arg0: i32) -> (i32, i32) {
    %c0_i32 = arith.constant 0 : i32
    %c0_i32_0 = arith.constant 0 : i32
    %c0_i32_1 = arith.constant 0 : i32
    return %c0_i32, %c0_i32_0 : i32, i32
  }
  func.func @transform_3(%arg0: i32) -> (i32, i32) {
    %c0_i32 = arith.constant 0 : i32
    %c0_i32_0 = arith.constant 0 : i32
    %c0_i32_1 = arith.constant 0 : i32
    return %c0_i32, %c0_i32_0 : i32, i32
  }
  func.func @transform_4(%arg0: i32) -> (i32, i32) {
    %c0_i32 = arith.constant 0 : i32
    %c0_i32_0 = arith.constant 0 : i32
    %c0_i32_1 = arith.constant 0 : i32
    return %c0_i32, %c0_i32_0 : i32, i32
  }
  func.func @transform_5(%arg0: i32) -> (i32, i32) {
    %c0_i32 = arith.constant 0 : i32
    %c0_i32_0 = arith.constant 0 : i32
    %c0_i32_1 = arith.constant 0 : i32
    return %c0_i32, %c0_i32_0 : i32, i32
  }
  func.func @transform_6(%arg0: i32) -> (i32, i32) {
    %c0_i32 = arith.constant 0 : i32
    %c0_i32_0 = arith.constant 0 : i32
    %c0_i32_1 = arith.constant 0 : i32
    return %c0_i32, %c0_i32_0 : i32, i32
  }
  func.func @transform_7(%arg0: i32) -> (i32, i32) {
    %c0_i32 = arith.constant 0 : i32
    %c0_i32_0 = arith.constant 0 : i32
    return %arg0, %c0_i32 : i32, i32
  }
}

</mosaic_0001>

<bundles_post_ra>
// kernel: mlp_gaussian_forward.1
= control target key start
LH: loop header
LB: loop body
LE: loop exit
PB: predicated region body
PF: predicated region fallthrough
CT: control target
= control target key end

     0   :  { %vm35_vm0 = vcmask 64512   ;;  %v483_v0 = vmov 0.0   ;;  %vm484_vm1 = vmmov 0   ;;  %v485_v4 = vmov 0.0|0.0   ;;  %s656_s1 = inlined_call_operand.vmem [shape: f32[8,128], index: 1, kind: input, shape index: {}]   ;;  %s657_s0 = inlined_call_operand.vmem [shape: f32[8,8], index: 0, kind: input, shape index: {}]   ;;  %s658_s3 = inlined_call_operand.vmem [shape: f32[128,128], index: 3, kind: input, shape index: {}]   ;;  %s659_s5 = inlined_call_operand.vmem [shape: f32[128,4], index: 5, kind: input, shape index: {}]   ;;  %s660_s2 = inlined_call_operand.vmem [shape: f32[1,128], index: 2, kind: input, shape index: {}]   ;;  %s661_s4 = inlined_call_operand.vmem [shape: f32[1,128], index: 4, kind: input, shape index: {}]   ;;  %s662_s6 = inlined_call_operand.vmem [shape: f32[1,4], index: 6, kind: input, shape index: {}]   ;;  %s663_s7 = inlined_call_operand.vmem [shape: f32[8,4], index: 7, kind: output, shape index: {}]  }
   0x1   :  { %349 = vmatprep.subr.mxu0 %v483_v0  ;;  %v27_v1 = vld [vmem:[%s656_s1] sm:$0xff]  ;;  %351 = vmatprep.mubr.msk.f32.mxu0 %vm484_vm1, %v483_v0  ;;  %v111_v5 = vld [vmem:[%s658_s3 + $0x8] sm:$0xff]  ;;  %v112_v6 = vld [vmem:[%s658_s3 + $0x10] sm:$0xff]  ;;  %vm303_vm2 = vcmask 31744  }
   0x2   :  { %v26_v2 = vld [vmem:[%s657_s0] sm:$0xff]  ;;  %350 = vmatpush3.msra.mxu0 %v27_v1  ;;  %424 = vmatprep.subr.bf16.mxu1 %v485_v4  ;;  %v113_v7 = vld [vmem:[%s658_s3 + $0x18] sm:$0xff]  ;;  %v115_v11 = vld [vmem:[%s658_s3 + $0x28] sm:$0xff] }
   0x3   :  { %v110_v3 = vld [vmem:[%s658_s3] sm:$0xff]  ;;  %352 = vmatmul.mubr.msk.f32.vlgmr.msra.gmra.mrb[0].mxu0 %vm35_vm0, %v26_v2  ;;  %386 = vmatprep.mubr.msk.f32.mxu1 %vm484_vm1, %v483_v0  ;;  %v428_v9 = vpack.c.bf16 %v113_v7, %v112_v6  ;;  %v116_v13 = vld [vmem:[%s658_s3 + $0x30] sm:$0xff]  ;;  %v117_v14 = vld [vmem:[%s658_s3 + $0x38] sm:$0xff] }
   0x4   :  { %v425_v8 = vpack.c.bf16 %v111_v5, %v110_v3  ;;  %448 = vmatprep.subr.bf16.mxu0 %v485_v4  ;;  %421 = vmatprep.mubr.msk.f32.mxu0 %vm484_vm1, %v483_v0  ;;  %v114_v10 = vld [vmem:[%s658_s3 + $0x20] sm:$0xff]  ;;  %v434_v15 = vpack.c.bf16 %v117_v14, %v116_v13  ;;  %v119_v17 = vld [vmem:[%s658_s3 + $0x48] sm:$0xff]  ;;  %v120_v19 = vld [vmem:[%s658_s3 + $0x50] sm:$0xff] }
   0x5   :  { %v431_v12 = vpack.c.bf16 %v115_v11, %v114_v10  ;;  %v118_v16 = vld [vmem:[%s658_s3 + $0x40] sm:$0xff]  ;;  %v121_v20 = vld [vmem:[%s658_s3 + $0x58] sm:$0xff]  ;;  %v123_v23 = vld [vmem:[%s658_s3 + $0x68] sm:$0xff] }
   0x6   :  { %426 = vmatpush3.bf16.msra.mxu1 %v425_v8  ;;  %v437_v18 = vpack.c.bf16 %v119_v17, %v118_v16  ;;  %v440_v21 = vpack.c.bf16 %v121_v20, %v120_v19  ;;  %v122_v22 = vld [vmem:[%s658_s3 + $0x60] sm:$0xff]  ;;  %v124_v25 = vld [vmem:[%s658_s3 + $0x70] sm:$0xff]  ;;  %v125_v26 = vld [vmem:[%s658_s3 + $0x78] sm:$0xff] }
   0x7   :  { %427 = vmatprep.subr.bf16.mxu1 %v485_v4  ;;  %v443_v24 = vpack.c.bf16 %v123_v23, %v122_v22  ;;  %v446_v27 = vpack.c.bf16 %v125_v26, %v124_v25  ;;  %v204_v28 = vld [vmem:[%s659_s5] sm:$0xff]  ;;  %v205_v29 = vld [vmem:[%s659_s5 + $0x8] sm:$0xff]  ;;  %v206_v30 = vld [vmem:[%s659_s5 + $0x10] sm:$0xff] }
   0x8   :  { %v449_v31 = vpack.c.bf16 %v205_v29, %v204_v28  ;;  %v207_v32 = vld [vmem:[%s659_s5 + $0x18] sm:$0xff]  ;;  %v208_v34 = vld [vmem:[%s659_s5 + $0x20] sm:$0xff]  ;;  %v209_v35 = vld [vmem:[%s659_s5 + $0x28] sm:$0xff] }
   0x9   :  { %v452_v33 = vpack.c.bf16 %v207_v32, %v206_v30  ;;  %v455_v36 = vpack.c.bf16 %v209_v35, %v208_v34  ;;  %v210_v37 = vld [vmem:[%s659_s5 + $0x30] sm:$0xff]  ;;  %v211_v38 = vld [vmem:[%s659_s5 + $0x38] sm:$0xff]  ;;  %v212_v40 = vld [vmem:[%s659_s5 + $0x40] sm:$0xff] }
   0xa   :  { %429 = vmatpush3.bf16.msra.mxu1 %v428_v9  ;;  %450 = vmatpush3.bf16.msra.mxu0 %v449_v31  ;;  %v458_v39 = vpack.c.bf16 %v211_v38, %v210_v37  ;;  %v213_v41 = vld [vmem:[%s659_s5 + $0x48] sm:$0xff]  ;;  %v309_v43 = vld [vmem:[%s660_s2] ss:$0 sm:$0xff]  ;;  %v214_v48 = vld [vmem:[%s659_s5 + $0x50] sm:$0xff] }
   0xb   :  { %430 = vmatprep.subr.bf16.mxu1 %v485_v4  ;;  %451 = vmatprep.subr.bf16.mxu0 %v485_v4  ;;  %v461_v42 = vpack.c.bf16 %v213_v41, %v212_v40  ;;  %v215_v49 = vld [vmem:[%s659_s5 + $0x58] sm:$0xff]  ;;  %v216_v51 = vld [vmem:[%s659_s5 + $0x60] sm:$0xff]  ;;  %v217_v52 = vld [vmem:[%s659_s5 + $0x68] sm:$0xff] }
   0xc   :  { %v464_v50 = vpack.c.bf16 %v215_v49, %v214_v48  ;;  %v467_v53 = vpack.c.bf16 %v217_v52, %v216_v51  ;;  %v218_v54 = vld [vmem:[%s659_s5 + $0x70] sm:$0xff]  ;;  %v219_v55 = vld [vmem:[%s659_s5 + $0x78] sm:$0xff]  ;;  %v311_v57 = vld [vmem:[%s661_s4] ss:$0 sm:$0xff] }
   0xd   :  { %v470_v56 = vpack.c.bf16 %v219_v55, %v218_v54  ;;  %v312_v62 = vld [vmem:[%s662_s6] ss:$0 sm:$0xff] }
   0xe   :  { %432 = vmatpush3.bf16.msra.mxu1 %v431_v12  ;;  %453 = vmatpush3.bf16.msra.mxu0 %v452_v33 }
   0xf   :  { %433 = vmatprep.subr.bf16.mxu1 %v485_v4  ;;  %454 = vmatprep.subr.bf16.mxu0 %v485_v4 }
  0x12   :  { %435 = vmatpush3.bf16.msra.mxu1 %v434_v15  ;;  %456 = vmatpush3.bf16.msra.mxu0 %v455_v36 }
  0x13   :  { %436 = vmatprep.subr.bf16.mxu1 %v485_v4  ;;  %457 = vmatprep.subr.bf16.mxu0 %v485_v4 }
  0x16   :  { %438 = vmatpush3.bf16.msra.mxu1 %v437_v18  ;;  %459 = vmatpush3.bf16.msra.mxu0 %v458_v39 }
  0x17   :  { %439 = vmatprep.subr.bf16.mxu1 %v485_v4  ;;  %460 = vmatprep.subr.bf16.mxu0 %v485_v4 }
  0x1a   :  { %441 = vmatpush3.bf16.msra.mxu1 %v440_v21  ;;  %462 = vmatpush3.bf16.msra.mxu0 %v461_v42 }
  0x1b   :  { %442 = vmatprep.subr.bf16.mxu1 %v485_v4  ;;  %463 = vmatprep.subr.bf16.mxu0 %v485_v4 }
  0x1e   :  { %444 = vmatpush3.bf16.msra.mxu1 %v443_v24  ;;  %465 = vmatpush3.bf16.msra.mxu0 %v464_v50 }
  0x1f   :  { %445 = vmatprep.subr.bf16.mxu1 %v485_v4  ;;  %466 = vmatprep.subr.bf16.mxu0 %v485_v4 }
  0x22   :  { %447 = vmatpush3.bf16.msra.mxu1 %v446_v27  ;;  %468 = vmatpush3.bf16.msra.mxu0 %v467_v53 }
  0x23   :  { %469 = vmatprep.subr.bf16.mxu0 %v485_v4 }
  0x26   :  { %471 = vmatpush3.bf16.msra.mxu0 %v470_v56 }
  0xd6   :  { %v105_v44 = vpop.f32.mrb[0].mxu0 }
  0xd7   :  { %v106_v45 = vadd.f32 %v309_v43, %v105_v44  ;;  %v353_v46 = vpop.f32.mrb[1].mxu0 }
  0xd9   :  { %475 = vtanh.f32 %v106_v45 }
  0xe3   :  { %v476_v47 = vpop.eup %475 }
  0xe4   :  { %387 = vmatmul.mubr.f32.vlgmr.msra.gmra.mrb[0].mxu1 %v476_v47 }
 0x1b7   :  { %v199_v58 = vpop.f32.mrb[0].mxu1 }
 0x1b8   :  { %v200_v59 = vadd.f32 %v311_v57, %v199_v58  ;;  %v388_v60 = vpop.f32.mrb[1].mxu1 }
 0x1ba   :  { %477 = vtanh.f32 %v200_v59 }
 0x1c4   :  { %v478_v61 = vpop.eup %477 }
 0x1c5   :  { %422 = vmatmul.mubr.f32.vlgmr.msra.gmra.mrb[2].mxu0 %v478_v61 }
 0x298   :  { %v293_v63 = vpop.f32.mrb[2].mxu0 }
 0x299   :  { %v294_v0 = vadd.f32 %v312_v62, %v293_v63  ;;  %v423_v1 = vpop.f32.mrb[3].mxu0 }
 0x29b   :  { %v297_v2 = vsub.f32 0.0, %v294_v0 }
 0x29d   :  { %v298_v3 = vmul.f32 1.442695, %v297_v2 }
 0x29f   :  { %479 = vpow2.f32 %v298_v3 }
 0x2a9   :  { %v480_v4 = vpop.eup %479 }
 0x2aa   :  { %v300_v5 = vadd.f32 1.0, %v480_v4 }
 0x2ac   :  { %481 = vrcp.f32 %v300_v5 }
 0x2b6   :  { %v482_v6 = vpop.eup %481 }
 0x2b7   :  { %v302_v7 = vmul.f32 2.5, %v482_v6 }
 0x2b9   :  { %304 = vst.msk [vmem:[%s663_s7] sm:$0xff] %vm303_vm2, %v302_v7 }

</bundles_post_ra>
